<compile_context>
chip_gen: v6e
topology: v6e:2x2x1
jax: 0.10.0
libtpu: 0.0.40
codegen_flags: <defaults>
</compile_context>

<pallas_src>
import functools
import math

import jax
import jax.numpy as jnp
from jax.experimental import pallas as pl
from jax.experimental.pallas import tpu as pltpu


def _round_up(x: int, m: int) -> int:
    return ((x + m - 1) // m) * m


def _round_down(x: int, m: int) -> int:
    return (x // m) * m


def _global_max_kernel(x_ref, o_ref, acc_ref, *, hw, tile_hw, hw_steps,
                       fill_value):
    """Processes one (TILE_NC, TILE_HW) tile; running max over the HW axis."""
    k = pl.program_id(1)

    @pl.when(k == 0)
    def _init():
        acc_ref[...] = jnp.full(acc_ref.shape, fill_value, acc_ref.dtype)

    ragged = (hw % tile_hw) != 0
    n_chunks = tile_hw // 128

    acc = acc_ref[...]
    if ragged:
        # Hoisted lane iota: computed once per tile, reused by every chunk.
        lane = jax.lax.broadcasted_iota(jnp.int32, acc.shape, 1)
        base = k * tile_hw if hw_steps > 1 else 0

    # VPU-only elementwise max over 128-lane chunks (keeps the per-step body
    # off the XLU); the cross-lane reduce is deferred to the epilogue.
    for c in range(n_chunks):
        chunk = x_ref[:, c * 128:(c + 1) * 128]
        if ragged:
            chunk_may_pad = True
            if hw_steps == 1:
                # Single HW step: the boundary chunk is statically known, so
                # only chunks that actually cross the valid extent get masked.
                chunk_may_pad = (c + 1) * 128 > hw
            if chunk_may_pad:
                # Mask lanes past the true H*W extent: garbage in the padded
                # portion of the last HW block must not win the max.
                col = base + c * 128 + lane
                chunk = jnp.where(col < hw, chunk, fill_value)
        acc = jnp.maximum(acc, chunk)
    acc_ref[...] = acc

    @pl.when(k == hw_steps - 1)
    def _finalize():
        # Single cross-lane reduce + store, once per NC tile (epilogue only).
        o_ref[...] = jnp.max(acc_ref[...], axis=-1, keepdims=True).astype(
            o_ref.dtype)


def global_max_pool2d(x: jax.Array) -> jax.Array:
    """Global max pool over the last two (spatial) dims (NCHW -> (N, C))."""
    assert x.ndim >= 3, "expected (..., C, H, W)"
    H, W = x.shape[-2], x.shape[-1]
    lead = x.shape[:-2]
    nc = math.prod(lead)
    hw = H * W
    x2 = x.reshape(nc, hw)

    dtype = x.dtype
    itemsize = jnp.dtype(dtype).itemsize

    # Sublane multiple for the second-minor dim (8 f32 / 16 bf16 / 32 int8).
    sub = max(8, 32 // itemsize)
    nc_pad = _round_up(nc, sub)
    hw_pad = _round_up(hw, 128)

    # Target ~4 MiB per input tile: double-buffered inputs + scratch stay
    # comfortably inside every generation's scoped-VMEM budget, while being
    # large enough to amortize per-grid-step overhead near the HBM roofline.
    target_tile_bytes = 4 << 20

    # Lane-dense HW tiles: multiple of 128, up to 2048 lanes initially.
    tile_hw = min(2048, hw_pad)
    # Size TILE_NC so one input tile is ~target_tile_bytes.
    nc_cap = max(sub, _round_down(target_tile_bytes // (tile_hw * itemsize), sub))
    tile_nc = min(nc_cap, nc_pad)

    # Small-NC / large-HW case: all of NC fits in one tile but the tile is
    # still far below target -> widen the HW tile (cap 8192 lanes so the
    # unrolled chunk loop stays short) to keep each DMA step large.
    if tile_nc == nc_pad and tile_nc * tile_hw * itemsize < target_tile_bytes:
        grown = _round_down(target_tile_bytes // (tile_nc * itemsize), 128)
        tile_hw = max(tile_hw, min(hw_pad, 8192, grown))

    grid = (pl.cdiv(nc, tile_nc), pl.cdiv(hw, tile_hw))

    if jnp.issubdtype(dtype, jnp.floating):
        fill_value = float("-inf")
    else:
        fill_value = int(jnp.iinfo(dtype).min)

    # VMEM budget: 2x double-buffered input tile + accumulator scratch +
    # output buffers, plus headroom.  Clamped well under every generation's
    # physical VMEM (incl. v7x's 64 MiB).
    in_bytes = tile_nc * tile_hw * itemsize
    acc_bytes = tile_nc * 128 * itemsize
    need = 2 * in_bytes + acc_bytes + 2 * tile_nc * itemsize + (2 << 20)
    vmem_limit = int(min(max(need, 32 << 20), 48 << 20))

    kernel = functools.partial(
        _global_max_kernel, hw=hw, tile_hw=tile_hw, hw_steps=grid[1],
        fill_value=fill_value)

    out = pl.pallas_call(
        kernel,
        out_shape=jax.ShapeDtypeStruct((nc, 1), dtype),
        grid=grid,
        in_specs=[pl.BlockSpec((tile_nc, tile_hw), lambda i, k: (i, k))],
        out_specs=pl.BlockSpec((tile_nc, 1), lambda i, k: (i, 0)),
        scratch_shapes=[pltpu.VMEM((tile_nc, 128), dtype)],
        compiler_params=pltpu.CompilerParams(
            dimension_semantics=("parallel", "arbitrary"),
            vmem_limit_bytes=vmem_limit,
        ),
    )(x2)

    # PyTorch module: out.view(*x_size[:-3], -1) -> (N, C) for NCHW input.
    # TODO(synk): return_indices=True path (argmax over flattened H*W) not
    # implemented; the module default is return_indices=False.
    return out.reshape(x.shape[:-3] + (-1,))


if __name__ == "__main__":
    key = jax.random.PRNGKey(0)

    # Canonical small test (NCHW, matches the module's expected usage).
    x = jax.random.normal(key, (2, 4, 16, 16), dtype=jnp.float32)
    y = global_max_pool2d(x)
    jax.block_until_ready(y)
    y_ref = jnp.max(x.reshape(2, 4, -1), axis=-1)
    assert y.shape == (2, 4)
    assert y.dtype == x.dtype
    assert jnp.allclose(y, y_ref), "mismatch vs reference (exact-tile case)"

    # Ragged HW case: exercises masking of the padded tail of the lane axis.
    x2 = jax.random.normal(jax.random.PRNGKey(1), (2, 4, 4, 587),
                           dtype=jnp.float32)
    y2 = global_max_pool2d(x2)
    jax.block_until_ready(y2)
    y2_ref = jnp.max(x2.reshape(2, 4, -1), axis=-1)
    assert y2.shape == (2, 4)
    assert jnp.allclose(y2, y2_ref), "mismatch vs reference (ragged HW case)"

    # Odd N*C and odd H*W: exercises sublane padding (dropped OOB output
    # rows) together with lane masking in a single-HW-step grid.
    x3 = jax.random.normal(jax.random.PRNGKey(2), (3, 5, 9, 11),
                           dtype=jnp.float32)
    y3 = global_max_pool2d(x3)
    jax.block_until_ready(y3)
    y3_ref = jnp.max(x3.reshape(3, 5, -1), axis=-1)
    assert y3.shape == (3, 5)
    assert jnp.allclose(y3, y3_ref), "mismatch vs reference (odd-shape case)"

    print("KERNEL_OK")
</pallas_src>

<mosaic_0001>
module attributes {stable_mosaic.version = 11 : i64} {
  func.func @_global_max_kernel(%arg0: i32, %arg1: i32, %arg2: memref<8x256xf32, #tpu.memory_space<vmem>>, %arg3: memref<8x1xf32, #tpu.memory_space<vmem>>, %arg4: memref<8x128xf32, #tpu.memory_space<vmem>>) attributes {dimension_semantics = [#tpu.dimension_semantics<parallel>, #tpu.dimension_semantics<arbitrary>], iteration_bounds = array<i64: 1, 1>, scalar_prefetch = 0 : i64, scratch_operands = 1 : i64, tpu.core_type = #tpu.core_type<tc>, window_params = [{transform_indices = @transform_0, window_bounds = array<i64: 8, 256>}, {transform_indices = @transform_1, window_bounds = array<i64: 8, 1>}]} {
    %c0_i32 = arith.constant 0 : i32
    %0 = arith.cmpi eq, %arg1, %c0_i32 : i32
    %1 = arith.extui %0 : i1 to i32
    %c0_i32_0 = arith.constant 0 : i32
    %2 = arith.cmpi ne, %1, %c0_i32_0 : i32
    scf.if %2 {
      %cst = arith.constant 0xFF800000 : f32
      %12 = vector.broadcast %cst : f32 to vector<8x128xf32>
      %c0_9 = arith.constant 0 : index
      %c0_10 = arith.constant 0 : index
      %13 = vector.load %arg4[%c0_9, %c0_10] : memref<8x128xf32, #tpu.memory_space<vmem>>, vector<8x128xf32>
      tpu.vector_store %arg4[%c0_9, %c0_10], %12 {strides = array<i32>} : memref<8x128xf32, #tpu.memory_space<vmem>>, vector<8x128xf32>,
    } else {
    }
    %c0 = arith.constant 0 : index
    %c0_1 = arith.constant 0 : index
    %3 = vector.load %arg4[%c0, %c0_1] : memref<8x128xf32, #tpu.memory_space<vmem>>, vector<8x128xf32>
    %c0_2 = arith.constant 0 : index
    %c0_3 = arith.constant 0 : index
    %4 = vector.load %arg2[%c0_2, %c0_3] : memref<8x256xf32, #tpu.memory_space<vmem>>, vector<8x128xf32>
    %5 = arith.maximumf %3, %4 : vector<8x128xf32>
    %c0_4 = arith.constant 0 : index
    %c128 = arith.constant 128 : index
    %6 = vector.load %arg2[%c0_4, %c128] : memref<8x256xf32, #tpu.memory_space<vmem>>, vector<8x128xf32>
    %7 = arith.maximumf %5, %6 : vector<8x128xf32>
    %c0_5 = arith.constant 0 : index
    %c0_6 = arith.constant 0 : index
    %8 = vector.load %arg4[%c0_5, %c0_6] : memref<8x128xf32, #tpu.memory_space<vmem>>, vector<8x128xf32>
    tpu.vector_store %arg4[%c0_5, %c0_6], %7 {strides = array<i32>} : memref<8x128xf32, #tpu.memory_space<vmem>>, vector<8x128xf32>,
    %c0_i32_7 = arith.constant 0 : i32
    %9 = arith.cmpi eq, %arg1, %c0_i32_7 : i32
    %10 = arith.extui %9 : i1 to i32
    %c0_i32_8 = arith.constant 0 : i32
    %11 = arith.cmpi ne, %10, %c0_i32_8 : i32
    scf.if %11 {
      %c0_9 = arith.constant 0 : index
      %c0_10 = arith.constant 0 : index
      %12 = vector.load %arg4[%c0_9, %c0_10] : memref<8x128xf32, #tpu.memory_space<vmem>>, vector<8x128xf32>
      %cst = arith.constant dense<0xFF800000> : vector<8xf32>
      %13 = vector.multi_reduction <maximumf>, %12, %cst [1] : vector<8x128xf32> to vector<8xf32>
      %14 = vector.shape_cast %13 : vector<8xf32> to vector<8x1xf32>
      %c0_11 = arith.constant 0 : index
      %c0_12 = arith.constant 0 : index
      %15 = vector.load %arg3[%c0_11, %c0_12] : memref<8x1xf32, #tpu.memory_space<vmem>>, vector<8x1xf32>
      tpu.vector_store %arg3[%c0_11, %c0_12], %14 {strides = array<i32>} : memref<8x1xf32, #tpu.memory_space<vmem>>, vector<8x1xf32>,
    } else {
    }
    return
  }
  func.func @transform_0(%arg0: i32, %arg1: i32) -> (i32, i32) {
    %c0_i32 = arith.constant 0 : i32
    return %arg0, %arg1 : i32, i32
  }
  func.func @transform_1(%arg0: i32, %arg1: i32) -> (i32, i32) {
    %c0_i32 = arith.constant 0 : i32
    %c0_i32_0 = arith.constant 0 : i32
    return %arg0, %c0_i32 : i32, i32
  }
}

</mosaic_0001>

<bundles_post_ra>
// kernel: tpu_custom_call.1
= control target key start
LH: loop header
LB: loop body
LE: loop exit
PB: predicated region body
PF: predicated region fallthrough
CT: control target
= control target key end

     0   :  { %6 = vsyncpa [#allocation4], 0  ;;  %s67_s6 = smov [#allocation3]   ;;  %s84_s0 = inlined_call_operand.hbm [shape: f32[8,256], index: 0, kind: input, shape index: {}]   ;;  %s85_s1 = inlined_call_operand.vmem [shape: f32[8,1], index: 1, kind: output, shape index: {}]  }
   0x1   :  { %s13_s7 = sshll.u32 %s67_s6, 4  ;;  %s14_s7 = int_to_ptr.vmem [resolvable:$true] %s13_s7 }
   0x2   :  { %s53_s8 = scalar_lea.vmem %s14_s7, 256  ;;  %p58_p1 = scmp.lt.s32.totalorder %s14_s7, %s14_s7 }
   0x3   :  { %p54_p0 = scmp.ne.s32.totalorder %s14_s7, %s53_s8  ;;  %p59_p2 = scmp.lt.s32.totalorder %s53_s8, %s53_s8 }
   0x5   :  { %p60_p3 = por %p59_p2, %p58_p1 }
   0x7   :  { %p61_p4 = pnand %p60_p3, %p54_p0 }
   0x9   :  { %64 = shalt.err (!%p61_p4)
}
   0xa   :  { %16 = dma.hbm_to_vmem [thread:$0]  %s84_s0, 256, %s14_s7, [#allocation4]  }
   0xb   :  { %65 = dma.done.wait [#allocation4], 256  }
   0xc   :  { %66 = vsyncadd [#allocation4], 4294967040  ;;  %v26_v0 = vld [vmem:[#allocation3] sm:$0xff]  ;;  %v28_v1 = vld [vmem:[#allocation3 + $0x8] sm:$0xff]  ;;  %vm37_vm0 = vcmask 7168  }
   0xd   :  { %v29_v2 = vmax.f32 %v26_v0, %v28_v1 }
   0xf   :  { %35 = vmax.xlane.f32.xlu0 %v29_v2 }
  0x98   :  { %v36_v3 = vpop.xlane.xlu0 %35 }
  0x99   :  { %38 = vst.msk [vmem:[%s85_s1] sm:$0xff] %vm37_vm0, %v36_v3 }
  0x9a   :  { %43 = vsyncpa [#allocation4], 1 }

</bundles_post_ra>
